<compile_context>
chip_gen: v7x
topology: tpu7x:2x2x1
jax: 0.10.0
libtpu: 0.0.40
codegen_flags: <defaults>
</compile_context>

<pallas_src>
from functools import partial

import jax
import jax.numpy as jnp
from jax.experimental import pallas as pl
from jax.experimental.pallas import tpu as pltpu


def _round_up(x, m):
    return ((x + m - 1) // m) * m


def _batch_tiling(B):
    """Pick (tile_rows TB, padded_batch Bp)."""
    if B <= 128:
        tb = _round_up(B, 8)          # one sublane-aligned tile
        return tb, tb
    # 256-512-row tiles reach ~85% of the streaming roofline; keep an even
    # tile count so v7x's two TensorCores split the "parallel" axis evenly.
    tb = min(512, _round_up(_round_up(B, 128) // 2, 128))
    bp = _round_up(B, 2 * tb)
    return tb, bp


# ------------------------------- kernels ----------------------------------

def _gru_cell(x, hx, wf_ref, wg_ref, b_ref, H):
    """Feature Linear+ReLU then a PyTorch-semantics GRUCell (gate order r,z,n).

    Packed bias row b_ref: [b_f(H) | b_ih(3H) | b_hh(3H) | b_head(HP)].
    Weight slab wg_ref: (H, 6H) bf16 = [W_ih(H,3H) | W_hh(H,3H)].
    """
    b_f = b_ref[:, 0:H]
    b_ih = b_ref[:, H:4 * H]
    b_hh = b_ref[:, 4 * H:7 * H]

    feat = jnp.dot(x.astype(jnp.bfloat16), wf_ref[...],
                   preferred_element_type=jnp.float32) + b_f
    feat = jnp.maximum(feat, 0.0)

    # Two fused gate matmuls; gate slices below are 128-lane-aligned views.
    gi = jnp.dot(feat.astype(jnp.bfloat16), wg_ref[:, 0:3 * H],
                 preferred_element_type=jnp.float32) + b_ih
    gh = jnp.dot(hx.astype(jnp.bfloat16), wg_ref[:, 3 * H:6 * H],
                 preferred_element_type=jnp.float32) + b_hh

    r = jax.nn.sigmoid(gi[:, 0:H] + gh[:, 0:H])
    z = jax.nn.sigmoid(gi[:, H:2 * H] + gh[:, H:2 * H])
    n = jnp.tanh(gi[:, 2 * H:3 * H] + r * gh[:, 2 * H:3 * H])
    # (1 - z) * n + z * hx with one fewer VPU op.
    return n + z * (hx - n)


def grunet_step_kernel(state_ref, hx_ref, wf_ref, wg_ref, wh_ref, b_ref,
                       head_ref, hx_out_ref):
    H = hx_ref.shape[1]
    h_new = _gru_cell(state_ref[...], hx_ref[...], wf_ref, wg_ref, b_ref, H)
    head_ref[...] = (jnp.dot(h_new.astype(jnp.bfloat16), wh_ref[...],
                             preferred_element_type=jnp.float32)
                     + b_ref[:, 7 * H:])
    hx_out_ref[...] = h_new


def grunet_rollout_kernel(x_ref, hx0_ref, wf_ref, wg_ref, wh_ref, b_ref,
                          head_ref, hxT_ref, hx_sc):
    """One fused rollout: grid=(batch_tiles, T); hx carried in VMEM scratch."""
    H = hx0_ref.shape[1]
    t = pl.program_id(1)

    @pl.when(t == 0)
    def _():
        hx_sc[...] = hx0_ref[...]

    h_new = _gru_cell(x_ref[...], hx_sc[...], wf_ref, wg_ref, b_ref, H)
    head_ref[...] = (jnp.dot(h_new.astype(jnp.bfloat16), wh_ref[...],
                             preferred_element_type=jnp.float32)
                     + b_ref[:, 7 * H:])
    hx_sc[...] = h_new
    hxT_ref[...] = h_new          # constant block index -> only last t lands in HBM


# --------------------------- parameters / packing ---------------------------

def init_params(key, in_size, out_size, hidden):
    """Deterministic init mimicking PyTorch's U(-1/sqrt(fan_in), 1/sqrt(fan_in))."""
    def uni(k, shape, fan_in):
        bound = 1.0 / jnp.sqrt(jnp.float32(fan_in))
        return jax.random.uniform(k, shape, jnp.float32, -bound, bound)

    ks = jax.random.split(key, 10)
    p = {}
    p["wf"] = uni(ks[0], (in_size, hidden), in_size)        # feature Linear
    p["bf"] = uni(ks[1], (hidden,), in_size)
    p["w_ih"] = uni(ks[2], (hidden, 3 * hidden), hidden)    # GRU input weights (r|z|n)
    p["b_ih"] = uni(ks[3], (3 * hidden,), hidden)
    p["w_hh"] = uni(ks[4], (hidden, 3 * hidden), hidden)    # GRU hidden weights (r|z|n)
    p["b_hh"] = uni(ks[5], (3 * hidden,), hidden)
    p["wpi"] = uni(ks[6], (hidden, out_size), hidden)       # policy head
    p["bpi"] = uni(ks[7], (out_size,), hidden)
    p["wv"] = uni(ks[8], (hidden, 1), hidden)               # value head
    p["bv"] = uni(ks[9], (1,), hidden)
    return p


def pack_params(p):
    """Pack 10 parameter tensors into 4 kernel operands (weights in bf16)."""
    H = p["w_ih"].shape[0]
    A = p["wpi"].shape[1]
    HP = _round_up(A + 1, 128)          # lane-dense merged policy+value head

    w_gates = jnp.concatenate([p["w_ih"], p["w_hh"]], axis=1)   # (H, 6H)

    w_head = jnp.zeros((H, HP), jnp.float32)
    w_head = w_head.at[:, :A].set(p["wpi"])
    w_head = w_head.at[:, A].set(p["wv"][:, 0])

    b_all = jnp.zeros((1, 7 * H + HP), jnp.float32)
    b_all = b_all.at[0, 0:H].set(p["bf"])
    b_all = b_all.at[0, H:4 * H].set(p["b_ih"])
    b_all = b_all.at[0, 4 * H:7 * H].set(p["b_hh"])
    b_all = b_all.at[0, 7 * H:7 * H + A].set(p["bpi"])
    b_all = b_all.at[0, 7 * H + A].set(p["bv"][0])

    return {"w_feat": p["wf"].astype(jnp.bfloat16),
            "w_gates": w_gates.astype(jnp.bfloat16),
            "w_head": w_head.astype(jnp.bfloat16),
            "b_all": b_all,
            "out_size": A, "hidden": H, "head_pad": HP}


def _resident_weight_specs(in_size, H, HP):
    """Constant-index BlockSpecs: weights stay resident in VMEM across the grid."""
    def const(*_):
        return (0, 0)
    return [
        pl.BlockSpec((in_size, H), const),          # w_feat
        pl.BlockSpec((H, 6 * H), const),            # w_ih | w_hh slab
        pl.BlockSpec((H, HP), const),               # merged head
        pl.BlockSpec((1, 7 * H + HP), const),       # packed biases
    ]


# ------------------------------- wrappers ----------------------------------

@partial(jax.jit, static_argnames=("out_size", "hidden", "head_pad"),
         donate_argnums=(1,))
def _grunet_forward_impl(state, gru_hx, w_feat, w_gates, w_head, b_all, *,
                         out_size, hidden, head_pad):
    B, in_size = state.shape
    H, A, HP = hidden, out_size, head_pad
    TB, Bp = _batch_tiling(B)

    state_p = state if Bp == B else jnp.pad(state, ((0, Bp - B), (0, 0)))
    hx_p = gru_hx if Bp == B else jnp.pad(gru_hx, ((0, Bp - B), (0, 0)))

    head, hx_new = pl.pallas_call(
        grunet_step_kernel,
        out_shape=(jax.ShapeDtypeStruct((Bp, HP), jnp.float32),
                   jax.ShapeDtypeStruct((Bp, H), jnp.float32)),
        grid=(Bp // TB,),
        in_specs=[pl.BlockSpec((TB, in_size), lambda b: (b, 0)),
                  pl.BlockSpec((TB, H), lambda b: (b, 0))]
                 + _resident_weight_specs(in_size, H, HP),
        out_specs=(pl.BlockSpec((TB, HP), lambda b: (b, 0)),
                   pl.BlockSpec((TB, H), lambda b: (b, 0))),
        input_output_aliases={1: 1},     # hx updated in place (input donated)
        compiler_params=pltpu.CompilerParams(
            dimension_semantics=("parallel",)),
    )(state_p, hx_p, w_feat, w_gates, w_head, b_all)

    return head[:B, :A], head[:B, A:A + 1], hx_new[:B]


def grunet_forward(state, gru_hx, packed):
    """Single-step module forward: (state, gru_hx) -> (logits, value, new_hx).

    NOTE: gru_hx is donated (updated in place); do not reuse it afterwards.
    """
    return _grunet_forward_impl(
        state, gru_hx, packed["w_feat"], packed["w_gates"], packed["w_head"],
        packed["b_all"], out_size=packed["out_size"], hidden=packed["hidden"],
        head_pad=packed["head_pad"])


@partial(jax.jit, static_argnames=("out_size", "hidden", "head_pad"))
def _grunet_rollout_impl(states, gru_hx, w_feat, w_gates, w_head, b_all, *,
                         out_size, hidden, head_pad):
    T, B, in_size = states.shape
    H, A, HP = hidden, out_size, head_pad
    TB, Bp = _batch_tiling(B)

    if Bp != B:
        states = jnp.pad(states, ((0, 0), (0, Bp - B), (0, 0)))
        gru_hx = jnp.pad(gru_hx, ((0, Bp - B), (0, 0)))

    head, hxT = pl.pallas_call(
        grunet_rollout_kernel,
        out_shape=(jax.ShapeDtypeStruct((T, Bp, HP), jnp.float32),
                   jax.ShapeDtypeStruct((Bp, H), jnp.float32)),
        grid=(Bp // TB, T),
        in_specs=[pl.BlockSpec((None, TB, in_size), lambda b, t: (t, b, 0)),
                  pl.BlockSpec((TB, H), lambda b, t: (b, 0))]
                 + _resident_weight_specs(in_size, H, HP),
        out_specs=(pl.BlockSpec((None, TB, HP), lambda b, t: (t, b, 0)),
                   pl.BlockSpec((TB, H), lambda b, t: (b, 0))),
        scratch_shapes=[pltpu.VMEM((TB, H), jnp.float32)],   # carried hidden state
        compiler_params=pltpu.CompilerParams(
            dimension_semantics=("parallel", "arbitrary")),
    )(states, gru_hx, w_feat, w_gates, w_head, b_all)

    return head[:, :B, :A], head[:, :B, A:A + 1], hxT[:B]


def grunet_rollout(states, gru_hx, packed):
    """Fused T-step rollout: states (T,B,in) -> per-step (logits, value), final hx."""
    return _grunet_rollout_impl(
        states, gru_hx, packed["w_feat"], packed["w_gates"], packed["w_head"],
        packed["b_all"], out_size=packed["out_size"], hidden=packed["hidden"],
        head_pad=packed["head_pad"])


# ------------------------------- references --------------------------------

def grunet_reference(state, hx, packed):
    """Pure-JAX reference using the same (bf16-rounded) weights as the kernel."""
    H, A = packed["hidden"], packed["out_size"]
    wf = packed["w_feat"].astype(jnp.float32)
    wg = packed["w_gates"].astype(jnp.float32)
    wh = packed["w_head"].astype(jnp.float32)
    b = packed["b_all"][0]
    feat = jnp.maximum(state @ wf + b[:H], 0.0)
    gi = feat @ wg[:, :3 * H] + b[H:4 * H]
    gh = hx @ wg[:, 3 * H:] + b[4 * H:7 * H]
    r = jax.nn.sigmoid(gi[:, :H] + gh[:, :H])
    z = jax.nn.sigmoid(gi[:, H:2 * H] + gh[:, H:2 * H])
    n = jnp.tanh(gi[:, 2 * H:] + r * gh[:, 2 * H:])
    h = (1.0 - z) * n + z * hx
    head = h @ wh + b[7 * H:]
    return head[:, :A], head[:, A:A + 1], h


def grunet_rollout_reference(states, hx, packed):
    def step(h, x):
        lg, v, h2 = grunet_reference(x, h, packed)
        return h2, (lg, v)
    hT, (lgs, vs) = jax.lax.scan(step, hx, states)
    return lgs, vs, hT


# --------------------------------- demo ------------------------------------

if __name__ == "__main__":
    # Small, module-consistent shapes (Pong: 6 actions, hidden defaults to 128).
    B, IN_SIZE, OUT_SIZE, HIDDEN, T = 8, 64, 6, 128, 12

    key = jax.random.PRNGKey(0)
    k_state, k_hx, k_seq = jax.random.split(key, 3)
    state = jax.random.normal(k_state, (B, IN_SIZE), jnp.float32)
    gru_hx = jax.random.normal(k_hx, (B, HIDDEN), jnp.float32)
    states_seq = jax.random.normal(k_seq, (T, B, IN_SIZE), jnp.float32)

    params = init_params(jax.random.PRNGKey(42), IN_SIZE, OUT_SIZE, HIDDEN)
    packed = pack_params(params)

    # References (read gru_hx) BEFORE the donating kernel call.
    ref_logits, ref_value, ref_hx = grunet_reference(state, gru_hx, packed)
    rref_lg, rref_v, rref_hx = grunet_rollout_reference(states_seq, gru_hx, packed)
    jax.block_until_ready((ref_logits, ref_value, ref_hx, rref_lg, rref_v, rref_hx))

    # Fused rollout kernel (one pallas_call for all T steps).
    r_lg, r_v, r_hx = grunet_rollout(states_seq, gru_hx, packed)
    jax.block_until_ready((r_lg, r_v, r_hx))
    assert r_lg.shape == (T, B, OUT_SIZE) and r_v.shape == (T, B, 1)
    assert r_hx.shape == (B, HIDDEN)
    assert jnp.allclose(r_lg, rref_lg, atol=5e-2, rtol=5e-2)
    assert jnp.allclose(r_v, rref_v, atol=5e-2, rtol=5e-2)
    assert jnp.allclose(r_hx, rref_hx, atol=5e-2, rtol=5e-2)

    # Single-step module forward (donates / updates gru_hx in place) — last.
    logits, value, hx_new = grunet_forward(state, gru_hx, packed)
    jax.block_until_ready((logits, value, hx_new))
    assert logits.shape == (B, OUT_SIZE)
    assert value.shape == (B, 1)
    assert hx_new.shape == (B, HIDDEN)
    assert jnp.allclose(logits, ref_logits, atol=2e-2, rtol=2e-2)
    assert jnp.allclose(value, ref_value, atol=2e-2, rtol=2e-2)
    assert jnp.allclose(hx_new, ref_hx, atol=2e-2, rtol=2e-2)

    print("KERNEL_OK")
</pallas_src>

<mosaic_0001>
module attributes {stable_mosaic.version = 11 : i64} {
  func.func @grunet_rollout_kernel(%arg0: i32, %arg1: i32, %arg2: memref<1x8x64xf32, #tpu.memory_space<vmem>>, %arg3: memref<8x128xf32, #tpu.memory_space<vmem>>, %arg4: memref<64x128xbf16, #tpu.memory_space<vmem>>, %arg5: memref<128x768xbf16, #tpu.memory_space<vmem>>, %arg6: memref<128x128xbf16, #tpu.memory_space<vmem>>, %arg7: memref<1x1024xf32, #tpu.memory_space<vmem>>, %arg8: memref<1x8x128xf32, #tpu.memory_space<vmem>>, %arg9: memref<8x128xf32, #tpu.memory_space<vmem>>, %arg10: memref<8x128xf32, #tpu.memory_space<vmem>>) attributes {dimension_semantics = [#tpu.dimension_semantics<parallel>, #tpu.dimension_semantics<arbitrary>], iteration_bounds = array<i64: 1, 12>, scalar_prefetch = 0 : i64, scratch_operands = 1 : i64, tpu.core_type = #tpu.core_type<tc>, window_params = [{transform_indices = @transform_0, window_bounds = array<i64: 1, 8, 64>}, {transform_indices = @transform_1, window_bounds = array<i64: 8, 128>}, {pipeline_mode = #tpu.pipeline_mode<synchronous>, transform_indices = @transform_2, window_bounds = array<i64: 64, 128>}, {pipeline_mode = #tpu.pipeline_mode<synchronous>, transform_indices = @transform_3, window_bounds = array<i64: 128, 768>}, {pipeline_mode = #tpu.pipeline_mode<synchronous>, transform_indices = @transform_4, window_bounds = array<i64: 128, 128>}, {pipeline_mode = #tpu.pipeline_mode<synchronous>, transform_indices = @transform_5, window_bounds = array<i64: 1, 1024>}, {transform_indices = @transform_6, window_bounds = array<i64: 1, 8, 128>}, {transform_indices = @transform_7, window_bounds = array<i64: 8, 128>}]} {
    %c0_i32 = arith.constant 0 : i32
    %0 = arith.cmpi eq, %arg1, %c0_i32 : i32
    %1 = arith.extui %0 : i1 to i32
    %c0_i32_0 = arith.constant 0 : i32
    %2 = arith.cmpi ne, %1, %c0_i32_0 : i32
    scf.if %2 {
      %c0_30 = arith.constant 0 : index
      %c0_31 = arith.constant 0 : index
      %61 = vector.load %arg3[%c0_30, %c0_31] : memref<8x128xf32, #tpu.memory_space<vmem>>, vector<8x128xf32>
      %c0_32 = arith.constant 0 : index
      %c0_33 = arith.constant 0 : index
      %62 = vector.load %arg10[%c0_32, %c0_33] : memref<8x128xf32, #tpu.memory_space<vmem>>, vector<8x128xf32>
      tpu.vector_store %arg10[%c0_32, %c0_33], %61 {strides = array<i32>} : memref<8x128xf32, #tpu.memory_space<vmem>>, vector<8x128xf32>,
    } else {
    }
    %c0 = arith.constant 0 : index
    %c0_1 = arith.constant 0 : index
    %c0_2 = arith.constant 0 : index
    %3 = vector.load %arg2[%c0, %c0_1, %c0_2] : memref<1x8x64xf32, #tpu.memory_space<vmem>>, vector<1x8x64xf32>
    %4 = vector.shape_cast %3 : vector<1x8x64xf32> to vector<8x64xf32>
    %c0_3 = arith.constant 0 : index
    %c0_4 = arith.constant 0 : index
    %5 = vector.load %arg10[%c0_3, %c0_4] : memref<8x128xf32, #tpu.memory_space<vmem>>, vector<8x128xf32>
    %c0_5 = arith.constant 0 : index
    %c0_6 = arith.constant 0 : index
    %6 = vector.load %arg7[%c0_5, %c0_6] : memref<1x1024xf32, #tpu.memory_space<vmem>>, vector<1x128xf32>
    %c0_7 = arith.constant 0 : index
    %c128 = arith.constant 128 : index
    %7 = vector.load %arg7[%c0_7, %c128] : memref<1x1024xf32, #tpu.memory_space<vmem>>, vector<1x384xf32>
    %c0_8 = arith.constant 0 : index
    %c512 = arith.constant 512 : index
    %8 = vector.load %arg7[%c0_8, %c512] : memref<1x1024xf32, #tpu.memory_space<vmem>>, vector<1x384xf32>
    %9 = arith.truncf %4 : vector<8x64xf32> to vector<8x64xbf16>
    %c0_9 = arith.constant 0 : index
    %c0_10 = arith.constant 0 : index
    %10 = vector.load %arg4[%c0_9, %c0_10] : memref<64x128xbf16, #tpu.memory_space<vmem>>, vector<64x128xbf16>
    %cst = arith.constant dense<0.000000e+00> : vector<8x128xf32>
    %11 = tpu.matmul %9, %10, %cst {dimension_numbers = #tpu.dot_dimension_numbers<[1], [0], [0], [1], [0, 0, 1, 1], [], []>} : vector<8x64xbf16>, vector<64x128xbf16>, vector<8x128xf32> -> vector<8x128xf32>
    %12 = vector.broadcast %6 : vector<1x128xf32> to vector<8x128xf32>
    %13 = arith.addf %11, %12 : vector<8x128xf32>
    %cst_11 = arith.constant 0.000000e+00 : f32
    %14 = vector.broadcast %cst_11 : f32 to vector<8x128xf32>
    %15 = arith.maximumf %13, %14 : vector<8x128xf32>
    %16 = arith.truncf %15 : vector<8x128xf32> to vector<8x128xbf16>
    %c0_12 = arith.constant 0 : index
    %c0_13 = arith.constant 0 : index
    %17 = vector.load %arg5[%c0_12, %c0_13] : memref<128x768xbf16, #tpu.memory_space<vmem>>, vector<128x384xbf16>
    %cst_14 = arith.constant dense<0.000000e+00> : vector<8x384xf32>
    %18 = tpu.matmul %16, %17, %cst_14 {dimension_numbers = #tpu.dot_dimension_numbers<[1], [0], [0], [1], [0, 0, 1, 1], [], []>} : vector<8x128xbf16>, vector<128x384xbf16>, vector<8x384xf32> -> vector<8x384xf32>
    %19 = vector.broadcast %7 : vector<1x384xf32> to vector<8x384xf32>
    %20 = arith.addf %18, %19 : vector<8x384xf32>
    %21 = arith.truncf %5 : vector<8x128xf32> to vector<8x128xbf16>
    %c0_15 = arith.constant 0 : index
    %c384 = arith.constant 384 : index
    %22 = vector.load %arg5[%c0_15, %c384] : memref<128x768xbf16, #tpu.memory_space<vmem>>, vector<128x384xbf16>
    %cst_16 = arith.constant dense<0.000000e+00> : vector<8x384xf32>
    %23 = tpu.matmul %21, %22, %cst_16 {dimension_numbers = #tpu.dot_dimension_numbers<[1], [0], [0], [1], [0, 0, 1, 1], [], []>} : vector<8x128xbf16>, vector<128x384xbf16>, vector<8x384xf32> -> vector<8x384xf32>
    %24 = vector.broadcast %8 : vector<1x384xf32> to vector<8x384xf32>
    %25 = arith.addf %23, %24 : vector<8x384xf32>
    %26 = vector.extract_strided_slice %20 {offsets = [0, 0], sizes = [8, 128], strides = [1, 1]} : vector<8x384xf32> to vector<8x128xf32>
    %27 = vector.extract_strided_slice %25 {offsets = [0, 0], sizes = [8, 128], strides = [1, 1]} : vector<8x384xf32> to vector<8x128xf32>
    %28 = arith.addf %26, %27 : vector<8x128xf32>
    %29 = arith.negf %28 : vector<8x128xf32>
    %30 = math.exp %29 : vector<8x128xf32>
    %cst_17 = arith.constant 1.000000e+00 : f32
    %31 = vector.broadcast %cst_17 : f32 to vector<8x128xf32>
    %32 = arith.addf %31, %30 : vector<8x128xf32>
    %33 = arith.divf %31, %32 : vector<8x128xf32>
    %34 = vector.extract_strided_slice %20 {offsets = [0, 128], sizes = [8, 128], strides = [1, 1]} : vector<8x384xf32> to vector<8x128xf32>
    %35 = vector.extract_strided_slice %25 {offsets = [0, 128], sizes = [8, 128], strides = [1, 1]} : vector<8x384xf32> to vector<8x128xf32>
    %36 = arith.addf %34, %35 : vector<8x128xf32>
    %37 = arith.negf %36 : vector<8x128xf32>
    %38 = math.exp %37 : vector<8x128xf32>
    %cst_18 = arith.constant 1.000000e+00 : f32
    %39 = vector.broadcast %cst_18 : f32 to vector<8x128xf32>
    %40 = arith.addf %39, %38 : vector<8x128xf32>
    %41 = arith.divf %39, %40 : vector<8x128xf32>
    %42 = vector.extract_strided_slice %20 {offsets = [0, 256], sizes = [8, 128], strides = [1, 1]} : vector<8x384xf32> to vector<8x128xf32>
    %43 = vector.extract_strided_slice %25 {offsets = [0, 256], sizes = [8, 128], strides = [1, 1]} : vector<8x384xf32> to vector<8x128xf32>
    %44 = arith.mulf %33, %43 : vector<8x128xf32>
    %45 = arith.addf %42, %44 : vector<8x128xf32>
    %46 = math.tanh %45 : vector<8x128xf32>
    %47 = arith.subf %5, %46 : vector<8x128xf32>
    %48 = arith.mulf %41, %47 : vector<8x128xf32>
    %49 = arith.addf %46, %48 : vector<8x128xf32>
    %50 = arith.truncf %49 : vector<8x128xf32> to vector<8x128xbf16>
    %c0_19 = arith.constant 0 : index
    %c0_20 = arith.constant 0 : index
    %51 = vector.load %arg6[%c0_19, %c0_20] : memref<128x128xbf16, #tpu.memory_space<vmem>>, vector<128x128xbf16>
    %cst_21 = arith.constant dense<0.000000e+00> : vector<8x128xf32>
    %52 = tpu.matmul %50, %51, %cst_21 {dimension_numbers = #tpu.dot_dimension_numbers<[1], [0], [0], [1], [0, 0, 1, 1], [], []>} : vector<8x128xbf16>, vector<128x128xbf16>, vector<8x128xf32> -> vector<8x128xf32>
    %c0_22 = arith.constant 0 : index
    %c896 = arith.constant 896 : index
    %53 = vector.load %arg7[%c0_22, %c896] : memref<1x1024xf32, #tpu.memory_space<vmem>>, vector<1x128xf32>
    %54 = vector.broadcast %53 : vector<1x128xf32> to vector<8x128xf32>
    %55 = arith.addf %52, %54 : vector<8x128xf32>
    %c0_23 = arith.constant 0 : index
    %c0_24 = arith.constant 0 : index
    %c0_25 = arith.constant 0 : index
    %56 = vector.load %arg8[%c0_23, %c0_24, %c0_25] : memref<1x8x128xf32, #tpu.memory_space<vmem>>, vector<1x8x128xf32>
    %57 = vector.shape_cast %56 : vector<1x8x128xf32> to vector<8x128xf32>
    %58 = vector.shape_cast %55 : vector<8x128xf32> to vector<1x8x128xf32>
    tpu.vector_store %arg8[%c0_23, %c0_24, %c0_25], %58 {strides = array<i32>} : memref<1x8x128xf32, #tpu.memory_space<vmem>>, vector<1x8x128xf32>,
    %c0_26 = arith.constant 0 : index
    %c0_27 = arith.constant 0 : index
    %59 = vector.load %arg10[%c0_26, %c0_27] : memref<8x128xf32, #tpu.memory_space<vmem>>, vector<8x128xf32>
    tpu.vector_store %arg10[%c0_26, %c0_27], %49 {strides = array<i32>} : memref<8x128xf32, #tpu.memory_space<vmem>>, vector<8x128xf32>,
    %c0_28 = arith.constant 0 : index
    %c0_29 = arith.constant 0 : index
    %60 = vector.load %arg9[%c0_28, %c0_29] : memref<8x128xf32, #tpu.memory_space<vmem>>, vector<8x128xf32>
    tpu.vector_store %arg9[%c0_28, %c0_29], %49 {strides = array<i32>} : memref<8x128xf32, #tpu.memory_space<vmem>>, vector<8x128xf32>,
    return
  }
  func.func @transform_0(%arg0: i32, %arg1: i32) -> (i32, i32, i32) {
    %c0_i32 = arith.constant 0 : i32
    %c0_i32_0 = arith.constant 0 : i32
    return %arg1, %arg0, %c0_i32 : i32, i32, i32
  }
  func.func @transform_1(%arg0: i32, %arg1: i32) -> (i32, i32) {
    %c0_i32 = arith.constant 0 : i32
    %c0_i32_0 = arith.constant 0 : i32
    return %arg0, %c0_i32 : i32, i32
  }
  func.func @transform_2(%arg0: i32, %arg1: i32) -> (i32, i32) {
    %c0_i32 = arith.constant 0 : i32
    %c0_i32_0 = arith.constant 0 : i32
    %c0_i32_1 = arith.constant 0 : i32
    return %c0_i32, %c0_i32_0 : i32, i32
  }
  func.func @transform_3(%arg0: i32, %arg1: i32) -> (i32, i32) {
    %c0_i32 = arith.constant 0 : i32
    %c0_i32_0 = arith.constant 0 : i32
    %c0_i32_1 = arith.constant 0 : i32
    return %c0_i32, %c0_i32_0 : i32, i32
  }
  func.func @transform_4(%arg0: i32, %arg1: i32) -> (i32, i32) {
    %c0_i32 = arith.constant 0 : i32
    %c0_i32_0 = arith.constant 0 : i32
    %c0_i32_1 = arith.constant 0 : i32
    return %c0_i32, %c0_i32_0 : i32, i32
  }
  func.func @transform_5(%arg0: i32, %arg1: i32) -> (i32, i32) {
    %c0_i32 = arith.constant 0 : i32
    %c0_i32_0 = arith.constant 0 : i32
    %c0_i32_1 = arith.constant 0 : i32
    return %c0_i32, %c0_i32_0 : i32, i32
  }
  func.func @transform_6(%arg0: i32, %arg1: i32) -> (i32, i32, i32) {
    %c0_i32 = arith.constant 0 : i32
    %c0_i32_0 = arith.constant 0 : i32
    return %arg1, %arg0, %c0_i32 : i32, i32, i32
  }
  func.func @transform_7(%arg0: i32, %arg1: i32) -> (i32, i32) {
    %c0_i32 = arith.constant 0 : i32
    %c0_i32_0 = arith.constant 0 : i32
    return %arg0, %c0_i32 : i32, i32
  }
}

</mosaic_0001>

<bundles_post_ra>
// kernel: _grunet_rollout_impl.1
= control target key start
LH: loop header
LB: loop body
LE: loop exit
PB: predicated region body
PF: predicated region fallthrough
CT: control target
= control target key end

     0   :  { %s2236_s0 = inlined_call_operand.hbm [shape: f32[12,8,64], index: 0, kind: input, shape index: {}]   ;;  %s2237_s1 = inlined_call_operand.vmem [shape: f32[8,128], index: 1, kind: input, shape index: {}]   ;;  %s2238_s2 = inlined_call_operand.hbm [shape: bf16[64,128], index: 2, kind: input, shape index: {}]   ;;  %s2239_s3 = inlined_call_operand.hbm [shape: bf16[128,768], index: 3, kind: input, shape index: {}]   ;;  %s2240_s4 = inlined_call_operand.hbm [shape: bf16[128,128], index: 4, kind: input, shape index: {}]   ;;  %s2241_s5 = inlined_call_operand.vmem [shape: f32[1,1024], index: 5, kind: input, shape index: {}]   ;;  %s2242_s6 = inlined_call_operand.vmem [shape: f32[12,8,128], index: 6, kind: output, shape index: {0}]   ;;  %s2243_s7 = inlined_call_operand.hbm [shape: f32[8,128], index: 7, kind: output, shape index: {1}]  }
   0x1   :  { %2251 = sst [smem:[#allocation16_spill]] %s2238_s2 }
   0x2   :  { %13 = vsyncpa [#allocation4], 0 }
   0x3   :  { %15 = vsyncpa [#allocation4 + $0x1], 0 }
   0x4   :  { %16 = vsyncpa [#allocation7], 0 }
   0x5   :  { %17 = vsyncpa [#allocation10], 0 }
   0x6   :  { %18 = vsyncpa [#allocation5], 0  ;;  %s1925_s24 = smov 0   ;;  %s1927_s25 = smov 0  }
   0x7   :  { %s1929_s26 = smov 0   ;;  %s1931_s27 = smov 0  }
   0x8   :  { %s1933_s28 = smov 0   ;;  %s1935_s29 = smov 0  }
   0x9 LB: > { %s2248_s30 = sadd.s32 4294967295, %s1871_s29   ;;  %p58_p0 = scmp.ne.s32.totalorder %s1855_s25, %s1851_s24  ;;  %s1871_s29 = sphi %s1935_s29, %s24_s29   ;;  %s1867_s28 = sphi %s1933_s28, %s2270_s28   ;;  %s1863_s27 = sphi %s1931_s27, %s2269_s27   ;;  %s1859_s26 = sphi %s1929_s26, %s2268_s26   ;;  %s1855_s25 = sphi %s1927_s25, %s2267_s25   ;;  %s1851_s24 = sphi %s1925_s24, %s2266_s24  }
   0xa   : > { %p1957_p1 = scmp.eq.s32.totalorder %s2248_s30, 0  ;;  %p1287_p2 = scmp.ge.s32.totalorder %s1871_s29, 1 }
   0xb   : > { %p233_p3 = scmp.lt.s32.totalorder %s1871_s29, 13  ;;  %s1873_s11 = smov [#allocation6]  }
   0xc   : > { %s2252_s8 = scalar_select %p1957_p1, 1, 0 }
   0xd   : > { %p1965_p4 = por %p1957_p1, %p58_p0  ;;  %p1969_p5 = pnand %p1287_p2, %p233_p3 }
   0xe   : > { %s252_s12 = sshll.u32 %s1873_s11, 4  ;;  %s1874_s14 = smov [#allocation8]   ;;  %s253_s12 = int_to_ptr.vmem [resolvable:$true] %s252_s12 }
   0xf   : > { %s2253_s9 = scalar_select %p1965_p4, 1, 0 }
  0x10   : > { %s2254_s10 = scalar_select %p1969_p5, 1, 0 }
  0x11   : > { %p1501_p6 = pneg %p1969_p5  ;;  %s265_s15 = sshll.u32 %s1874_s14, 4  ;;  %s1981_s15 = int_to_ptr.vmem [resolvable:$true] %s265_s15 }
  0x12   : > { %s2256_s2 = sld [smem:[#allocation16_spill]] }
  0x13   : > { %p1977_p7 = pnand %p1501_p6, %p1957_p1 }
  0x15   : > { %p1991_p9 = pneg %p1977_p7 }
  0x18   : > { %s1669_s18 = scalar_lea.hbm %s2256_s2, 512 }
  0x19   : > { %p1670_p8 = scmp.ne.s32.totalorder %s2256_s2, %s1669_s18  ;;  %p1676_p12 = scmp.lt.u32.totalorder %s1669_s18, %s2256_s2 }
  0x1b   : > { %p1672_p10 = pnand %p1991_p9, %p1670_p8 }
  0x1d   : > { %p1673_p11 = pneg %p1672_p10 }
  0x1f   : > { %p1678_p13 = pnand %p1676_p12, %p1673_p11 }
  0x21   : > { %1681 = shalt.err (!%p1678_p13)
}
  0x22   : > { %s1682_s24 = scalar_lea.vmem %s253_s12, 512  ;;  %p1690_p6 = scmp.lt.s32.totalorder %s253_s12, %s253_s12 }
  0x23   : > { %p1683_p0 = scmp.ne.s32.totalorder %s253_s12, %s1682_s24  ;;  %p1691_p1 = scmp.lt.s32.totalorder %s1682_s24, %s1682_s24 }
  0x25   : > { %p1685_p2 = pnand %p1683_p0, %p1991_p9  ;;  %p1692_p4 = por %p1691_p1, %p1690_p6 }
  0x27   : > { %p1686_p3 = pneg %p1685_p2 }
  0x29   : > { %p1693_p5 = pnand %p1692_p4, %p1686_p3 }
  0x2b   : > { %1696 = shalt.err (!%p1693_p5)
}
  0x2c   : > { %s2249_s11 = smov 64   ;;  %s2250_s14 = smov 4  }
  0x2d   : > { %1504 = dma.hbm_to_vmem [thread:$0]  (!%p1977_p7), %s2256_s2, 512, %s253_s12, [#allocation7], %s2249_s11, %s2249_s11, %s2250_s14  }
  0x2e   : > { %s1697_s20 = scalar_lea.hbm %s2239_s3, 6144 }
  0x2f   : > { %p1698_p1 = scmp.ne.s32.totalorder %s2239_s3, %s1697_s20  ;;  %p1704_p8 = scmp.lt.u32.totalorder %s1697_s20, %s2239_s3 }
  0x31   : > { %p1700_p4 = pnand %p1698_p1, %p1991_p9 }
  0x33   : > { %p1701_p5 = pneg %p1700_p4 }
  0x35   : > { %p1706_p10 = pnand %p1704_p8, %p1701_p5 }
  0x37   : > { %1709 = shalt.err (!%p1706_p10)
}
  0x38   : > { %s1710_s12 = scalar_lea.vmem %s1981_s15, 6144  ;;  %p1718_p0 = scmp.lt.s32.totalorder %s1981_s15, %s1981_s15 }
  0x39   : > { %p1711_p11 = scmp.ne.s32.totalorder %s1981_s15, %s1710_s12  ;;  %p1719_p2 = scmp.lt.s32.totalorder %s1710_s12, %s1710_s12 }
  0x3b   : > { %p1713_p12 = pnand %p1711_p11, %p1991_p9  ;;  %p1720_p3 = por %p1719_p2, %p1718_p0 }
  0x3d   : > { %p1714_p13 = pneg %p1713_p12 }
  0x3f   : > { %p1721_p6 = pnand %p1720_p3, %p1714_p13 }
  0x41   : > { %1724 = shalt.err (!%p1721_p6)
}
  0x42   : > { %s1877_s16 = smov 384   ;;  %s1878_s30 = smov 24  }
  0x43   : > { %1507 = dma.hbm_to_vmem [thread:$0]  (!%p1977_p7), %s2239_s3, 6144, %s1981_s15, [#allocation7], %s1877_s16, %s1877_s16, %s1878_s30  }
  0x44   : > { %s1879_s19 = smov [#allocation9]   ;;  %s1725_s24 = scalar_lea.hbm %s2240_s4, 1024 }
  0x45   : > { %s278_s20 = sshll.u32 %s1879_s19, 4  ;;  %p1726_p1 = scmp.ne.s32.totalorder %s2240_s4, %s1725_s24  ;;  %s279_s20 = int_to_ptr.vmem [resolvable:$true] %s278_s20 }
  0x46   : > { %p1732_p8 = scmp.lt.u32.totalorder %s1725_s24, %s2240_s4 }
  0x47   : > { %p1728_p4 = pnand %p1726_p1, %p1991_p9 }
  0x49   : > { %p1729_p5 = pneg %p1728_p4 }
  0x4b   : > { %p1734_p10 = pnand %p1732_p8, %p1729_p5 }
  0x4d   : > { %1737 = shalt.err (!%p1734_p10)
}
  0x4e   : > { %s1738_s15 = scalar_lea.vmem %s279_s20, 1024  ;;  %p1746_p0 = scmp.lt.s32.totalorder %s279_s20, %s279_s20 }
  0x4f   : > { %p1739_p11 = scmp.ne.s32.totalorder %s279_s20, %s1738_s15  ;;  %p1747_p2 = scmp.lt.s32.totalorder %s1738_s15, %s1738_s15 }
  0x51   : > { %p1741_p12 = pnand %p1739_p11, %p1991_p9  ;;  %p1748_p3 = por %p1747_p2, %p1746_p0 }
  0x53   : > { %p1742_p13 = pneg %p1741_p12 }
  0x55   : > { %p1749_p6 = pnand %p1748_p3, %p1742_p13 }
  0x57   : > { %1752 = shalt.err (!%p1749_p6)
}
  0x58   : > { %s2258_s11 = smov 4   ;;  %s2259_s16 = smov 64  }
  0x59   : > { %1510 = dma.hbm_to_vmem [thread:$0]  (!%p1977_p7), %s2240_s4, 1024, %s279_s20, [#allocation10], %s2259_s16, %s2259_s16, %s2258_s11  }
  0x5a   : > { %s33_s21 = sadd.s32 1, %s1867_s28  ;;  %s45_s13 = sadd.s32 1, %s1859_s26 }
  0x5b   : > { %p34_p9 = scmp.ge.s32.totalorder %s33_s21, 12  ;;  %p52_p1 = scmp.ne.s32.totalorder %s1859_s26, %s1855_s25 }
  0x5c   : > { %p53_p4 = scmp.eq.s32.totalorder %s1871_s29, 0  ;;  %p1518_p8 = scmp.lt.s32.totalorder %s1871_s29, 12 }
  0x5d   : > { %s2272_s21 = smov (%p34_p9, %s33_s21), 0  ;;  %s295_s17 = sand.u32 1, %s1859_s26  }
  0x5e   : > { %p54_p5 = por %p53_p4, %p52_p1  ;;  %s40_s30 = ssub.s32 %s1867_s28, %s2272_s21 }
  0x5f   : > { %p43_p10 = scmp.eq.s32.totalorder %s40_s30, 0  ;;  %s1293_s18 = sshll.u32 %s295_s17, 3 }
  0x60   : > { %s1294_s19 = sshll.u32 %s1867_s28, 7  ;;  %s299_s12 = scalar_lea.vmem [#allocation3], %s1293_s18 }
  0x61   : > { %s2067_s22 = scalar_select %p43_p10, %s1859_s26, %s45_s13  }
  0x62   : > { %s2072_s20 = scalar_lea.hbm %s2236_s0, %s1294_s19  ;;  %s307_s15 = sshll.u32 %s299_s12, 4  ;;  %s2078_s15 = int_to_ptr.vmem [resolvable:$true] %s307_s15 }
  0x63   : > { %p2074_p7 = pnand %p1518_p8, %p54_p5  ;;  %s296_s16 = scalar_lea.sflag [#allocation4], %s295_s17 }
  0x64   : > { %s1753_s2 = scalar_lea.hbm %s2072_s20, 128  ;;  %s1758_s30 = scalar_lea.hbm %s2236_s0, 1536 }
  0x65   : > { %p1754_p11 = scmp.ne.s32.totalorder %s2072_s20, %s1753_s2  ;;  %p1755_p12 = pneg %p2074_p7 }
  0x66   : > { %p1759_p2 = scmp.lt.u32.totalorder %s2072_s20, %s2236_s0  ;;  %p1760_p3 = scmp.lt.u32.totalorder %s1758_s30, %s1753_s2 }
  0x67   : > { %p1756_p13 = pnand %p1755_p12, %p1754_p11  ;;  %p1762_p9 = scmp.lt.u32.totalorder %s1753_s2, %s2072_s20 }
  0x68   : > { %p1761_p6 = por %p1760_p3, %p1759_p2 }
  0x69   : > { %p1757_p0 = pneg %p1756_p13 }
  0x6a   : > { %p1763_p1 = por %p1762_p9, %p1761_p6 }
  0x6c   : > { %p1764_p4 = pnand %p1763_p1, %p1757_p0 }
  0x6e   : > { %1767 = shalt.err (!%p1764_p4)
}
  0x6f   : > { %s1768_s17 = scalar_lea.vmem %s2078_s15, 128  ;;  %s1880_s23 = smov [#allocation3]  }
  0x70   : > { %p1769_p5 = scmp.ne.s32.totalorder %s2078_s15, %s1768_s17  ;;  %s1773_s24 = sshll.u32 %s1880_s23, 4  ;;  %s1774_s24 = int_to_ptr.vmem [resolvable:$false] %s1773_s24 }
  0x71   : > { %s1775_s12 = scalar_lea.vmem %s1774_s24, 256  ;;  %p1776_p11 = scmp.lt.s32.totalorder %s2078_s15, %s1774_s24 }
  0x72   : > { %p1771_p8 = pnand %p1769_p5, %p1755_p12  ;;  %p1777_p13 = scmp.lt.s32.totalorder %s1775_s12, %s1768_s17 }
  0x74   : > { %p1772_p10 = pneg %p1771_p8  ;;  %p1778_p2 = por %p1777_p13, %p1776_p11 }
  0x76   : > { %p1779_p3 = pnand %p1778_p2, %p1772_p10 }
  0x78   : > { %1782 = shalt.err (!%p1779_p3)
}
  0x79   : > { %1514 = dma.hbm_to_vmem [thread:$0]  (!%p2074_p7), %s2072_s20, 128, %s2078_s15, %s296_s16  }
  0x7a   : > { %p2261_p0 = scmp.ne.s32.totalorder %s2254_s10, 0 }
  0x7b   : > { %s318_s2 = sand.u32 (!%p2261_p0), 1, %s1855_s25   ;;  %p2262_p12 = scmp.ne.s32.totalorder (!%p2261_p0), %s2253_s9, 0 }
  0x7c   : > { %316 = sbr.rel (%p2261_p0) target bundleno = 894 (0x37e), region = 44  ;;  %s2108_s14 = sshll.u32 (!%p2261_p0), %s318_s2, 3 }
  0x7d   : > { %s319_s13 = scalar_lea.sflag (!%p2261_p0), [#allocation4], %s318_s2  ;;  %s322_s30 = scalar_lea.vmem (!%p2261_p0), [#allocation3], %s2108_s14 }
  0x83   : > { %1834 = dma.done.wait (%p2262_p12), %s319_s13, 128  }
  0x84   : > { %1836 = vsyncadd (%p2262_p12), %s319_s13, 4294967168  ;;  %p2263_p6 = scmp.ne.s32.totalorder %s2252_s8, 0 }
  0x86   : > { %1838 = dma.done.wait (%p2263_p6), [#allocation7], 6656  }
  0x87   : > { %1840 = vsyncadd (%p2263_p6), [#allocation7], 4294960640 }
  0x88   : > { %1842 = dma.done.wait (%p2263_p6), [#allocation10], 1024  }
  0x89   : > { %1844 = vsyncadd (%p2263_p6), [#allocation10], 4294966272  ;;  %p375_p7 = scmp.lt.s32.totalorder %s1863_s27, 11  ;;  %p1301_p9 = scmp.ne.s32.totalorder %s1863_s27, 0 }
  0x8a   : > { %v387_v0 = vld [vmem:[%s2237_s1] sm:$0xff] (!%p1301_p9) }
  0x8b   : > { %s376_s10 = scalar_select %p375_p7, %s1863_s27, 11 }
  0x8c   : > { %386 = sbr.rel (%p1301_p9) target bundleno = 147 (0x93), region = 64  ;;  %388 = vst [vmem:[#allocation2] sm:$0xff] (!%p1301_p9), %v387_v0 }
  0x8d   : > { %s1300_s20 = sshll.u32 %s376_s10, 3 }
  0x8e   : > { %s2128_s11 = scalar_lea.vmem %s2242_s6, %s1300_s20 }
  0x93 PF: > { %v1583_v1 = vld [vmem:[#allocation6] sm:$0xff]   ;;  %v1881_v2 = vmov 0.0   ;;  %v1584_v3 = vld [vmem:[#allocation6 + $0x8] sm:$0xff]   ;;  %vm1882_vm0 = vmmov 0   ;;  %v1585_v6 = vld [vmem:[#allocation6 + $0x10] sm:$0xff]   ;;  %vm433_vm1 = vcmask 523264  }
  0x94   : > { %1403 = vmatprep.subr.bf16.mxu0 %v1881_v2  ;;  %1411 = vmatprep.mubr.msk.bf16.mxu0 %vm1882_vm0, %v1881_v2  ;;  %v1587_v4 = vld [vmem:[#allocation8 + $0x4] ss:$24 sps:$4 sm:$0xff]   ;;  %v1589_v5 = vld [vmem:[#allocation8] ss:$24 sps:$4 sm:$0xff]   ;;  %v1591_v7 = vld [vmem:[#allocation8 + $0x34] ss:$24 sps:$4 sm:$0xff]  }
  0x95   : > { %1404 = vmatpush3.bf16.msra.mxu0 %v1583_v1  ;;  %655 = vmatprep.subr.bf16.mxu1 %v1587_v4  ;;  %v1586_v8 = vld [vmem:[#allocation6 + $0x18] sm:$0xff]   ;;  %v1593_v9 = vld [vmem:[#allocation8 + $0x30] ss:$24 sps:$4 sm:$0xff]   ;;  %v1599_v14 = vld [vmem:[#allocation8 + $0x94] ss:$24 sps:$4 sm:$0xff]   ;;  %v1883_v33 = vmov 0  }
  0x96   : > { %1405 = vmatprep.subr.bf16.mxu0 %v1881_v2  ;;  %656 = vmatpush1.bf16.msra.mxu1 %v1589_v5  ;;  %v1595_v10 = vld [vmem:[#allocation8 + $0x64] ss:$24 sps:$4 sm:$0xff]   ;;  %v1597_v12 = vld [vmem:[#allocation8 + $0x60] ss:$24 sps:$4 sm:$0xff]   ;;  %v1601_v16 = vld [vmem:[#allocation8 + $0x90] ss:$24 sps:$4 sm:$0xff]  }
  0x97   : > { %657 = vmatprep.subr.bf16.mxu1 %v1591_v7  ;;  %v389_v11 = vld [vmem:[%s322_s30] sm:$0xff]  ;;  %v1590_v15 = vld [vmem:[#allocation8 + $0x8] ss:$24 sps:$4 sm:$0xff]   ;;  %687 = vmatprep.mubr.bf16.mxu1 %v1883_v33  ;;  %v1619_v41 = vld [vmem:[#allocation8 + $0xc] ss:$24 sps:$4 sm:$0xff]   ;;  %s2264_s12 = sadd.s32 4294967295, %s1871_s29  }
  0x98   : > { %v394_v13 = vpack.c.bf16 %v389_v11, %v389_v11  ;;  %v1603_v17 = vld [vmem:[#allocation8 + $0xc4] ss:$24 sps:$4 sm:$0xff]   ;;  %v1594_v18 = vld [vmem:[#allocation8 + $0x38] ss:$24 sps:$4 sm:$0xff]   ;;  %v1607_v20 = vld [vmem:[#allocation8 + $0xf4] ss:$24 sps:$4 sm:$0xff]  }
  0x99   : > { %1406 = vmatpush3.bf16.msra.mxu0 %v1584_v3  ;;  %v1605_v19 = vld [vmem:[#allocation8 + $0xc0] ss:$24 sps:$4 sm:$0xff]   ;;  %v1609_v22 = vld [vmem:[#allocation8 + $0xf0] ss:$24 sps:$4 sm:$0xff]   ;;  %v1611_v23 = vld [vmem:[#allocation8 + $0x124] ss:$24 sps:$4 sm:$0xff]  }
  0x9a   : > { %1407 = vmatprep.subr.bf16.mxu0 %v1881_v2  ;;  %658 = vmatpush1.bf16.msra.mxu1 %v1593_v9  ;;  %v1598_v21 = vld [vmem:[#allocation8 + $0x68] ss:$24 sps:$4 sm:$0xff]   ;;  %v1602_v24 = vld [vmem:[#allocation8 + $0x98] ss:$24 sps:$4 sm:$0xff]   ;;  %v1615_v29 = vld [vmem:[#allocation8 + $0x154] ss:$24 sps:$4 sm:$0xff]  }
  0x9b   : > { %659 = vmatprep.subr.bf16.mxu1 %v1595_v10  ;;  %v1613_v25 = vld [vmem:[#allocation8 + $0x120] ss:$24 sps:$4 sm:$0xff]   ;;  %v1617_v30 = vld [vmem:[#allocation8 + $0x150] ss:$24 sps:$4 sm:$0xff]   ;;  %v1640_v42 = vld [vmem:[#allocation8 + $0x14] ss:$24 sps:$4 sm:$0xff]  }
  0x9c   : > { %v1606_v26 = vld [vmem:[#allocation8 + $0xc8] ss:$24 sps:$4 sm:$0xff]   ;;  %v1610_v27 = vld [vmem:[#allocation8 + $0xf8] ss:$24 sps:$4 sm:$0xff]   ;;  %v1622_v45 = vld [vmem:[#allocation8 + $0x3c] ss:$24 sps:$4 sm:$0xff]  }
  0x9d   : > { %1408 = vmatpush3.bf16.msra.mxu0 %v1585_v6  ;;  %v1614_v28 = vld [vmem:[#allocation8 + $0x128] ss:$24 sps:$4 sm:$0xff]   ;;  %v1618_v31 = vld [vmem:[#allocation8 + $0x158] ss:$24 sps:$4 sm:$0xff]   ;;  %v1644_v46 = vld [vmem:[#allocation8 + $0x44] ss:$24 sps:$4 sm:$0xff]  }
  0x9e   : > { %1409 = vmatprep.subr.bf16.mxu0 %v1881_v2  ;;  %660 = vmatpush1.bf16.msra.mxu1 %v1597_v12  ;;  %v1621_v32 = vld [vmem:[#allocation8 + $0x10] ss:$24 sps:$4 sm:$0xff]   ;;  %v1624_v44 = vld [vmem:[#allocation8 + $0x40] ss:$24 sps:$4 sm:$0xff]   ;;  %v1625_v48 = vld [vmem:[#allocation8 + $0x6c] ss:$24 sps:$4 sm:$0xff]  }
  0x9f   : > { %661 = vmatprep.subr.bf16.mxu1 %v1599_v14  ;;  %v1302_v34 = vld [vmem:[%s2241_s5] ss:$0 sm:$0xff]  ;;  %v1645_v49 = vld [vmem:[#allocation8 + $0x74] ss:$24 sps:$4 sm:$0xff]   ;;  %v1630_v50 = vld [vmem:[#allocation8 + $0xa0] ss:$24 sps:$4 sm:$0xff]  }
  0xa0   : > { %v1627_v47 = vld [vmem:[#allocation8 + $0x70] ss:$24 sps:$4 sm:$0xff]   ;;  %v1628_v51 = vld [vmem:[#allocation8 + $0x9c] ss:$24 sps:$4 sm:$0xff]   ;;  %v1631_v54 = vld [vmem:[#allocation8 + $0xcc] ss:$24 sps:$4 sm:$0xff]  }
  0xa1   : > { %1410 = vmatpush3.bf16.msra.mxu0 %v1586_v8  ;;  %v1646_v52 = vld [vmem:[#allocation8 + $0xa4] ss:$24 sps:$4 sm:$0xff]   ;;  %v1633_v53 = vld [vmem:[#allocation8 + $0xd0] ss:$24 sps:$4 sm:$0xff]   ;;  %v1647_v55 = vld [vmem:[#allocation8 + $0xd4] ss:$24 sps:$4 sm:$0xff]  }
  0xa2   : > { %1415 = vmatprep.subr.bf16.mxu0 %v1881_v2  ;;  %662 = vmatpush1.bf16.msra.mxu1 %v1601_v16  ;;  %v1636_v56 = vld [vmem:[#allocation8 + $0x100] ss:$24 sps:$4 sm:$0xff]   ;;  %v1634_v57 = vld [vmem:[#allocation8 + $0xfc] ss:$24 sps:$4 sm:$0xff]   ;;  %v1639_v59 = vld [vmem:[#allocation8 + $0x130] ss:$24 sps:$4 sm:$0xff]   ;;  %v512_v16 = vlaneseq }
  0xa3   : > { %663 = vmatprep.subr.bf16.mxu1 %v1603_v17  ;;  %v1648_v58 = vld [vmem:[#allocation8 + $0x104] ss:$24 sps:$4 sm:$0xff]   ;;  %v1649_v61 = vld [vmem:[#allocation8 + $0x134] ss:$24 sps:$4 sm:$0xff]   ;;  %v1643_v62 = vld [vmem:[#allocation8 + $0x160] ss:$24 sps:$4 sm:$0xff]  }
  0xa4   : > { %1412 = vmatmul.mubr.msk.bf16.vlgmr.msra.gmra.mrb[0].mxu0 %vm433_vm1, %v394_v13  ;;  %v1637_v60 = vld [vmem:[#allocation8 + $0x12c] ss:$24 sps:$4 sm:$0xff]   ;;  %v1641_v63 = vld [vmem:[#allocation8 + $0x15c] ss:$24 sps:$4 sm:$0xff]   ;;  %v513_v17 = vshrl.u32 %v512_v16, 7  ;;  %p2188_p1 = scmp.eq.s32.totalorder %s2264_s12, 11 }
  0xa5   : > { %1416 = vmatpush3.bf16.msra.mxu0 %v1590_v15  ;;  %1431 = vmatprep.mubr.msk.bf16.mxu0 %vm1882_vm0, %v1881_v2  ;;  %v2164_v0 = vld [vmem:[#allocation2] sm:$0xff]  ;;  %v1650_v1 = vld [vmem:[#allocation8 + $0x164] ss:$24 sps:$4 sm:$0xff]   ;;  %v1653_v6 = vld [vmem:[#allocation9 + $0x10] sm:$0xff]   ;;  %s1884_s14 = smov [#allocation11]  }
  0xa6   : > { %1417 = vmatprep.subr.bf16.mxu0 %v1881_v2  ;;  %664 = vmatpush1.bf16.msra.mxu1 %v1605_v19  ;;  %v736_v3 = vpack.c.bf16 %v2164_v0, %v2164_v0  ;;  %v1651_v4 = vld [vmem:[#allocation9] sm:$0xff]   ;;  %v1652_v5 = vld [vmem:[#allocation9 + $0x8] sm:$0xff]   ;;  %v1654_v7 = vld [vmem:[#allocation9 + $0x18] sm:$0xff]   ;;  %s1148_s13 = sshll.u32 %s1884_s14, 4  ;;  %s1149_s13 = int_to_ptr.vmem [resolvable:$true] %s1148_s13 }
  0xa7   : > { %665 = vmatprep.subr.bf16.mxu1 %v1607_v20  ;;  %v1655_v8 = vld [vmem:[#allocation9 + $0x20] sm:$0xff]   ;;  %v1656_v9 = vld [vmem:[#allocation9 + $0x28] sm:$0xff]   ;;  %v1657_v10 = vld [vmem:[#allocation9 + $0x30] sm:$0xff]   ;;  %s1783_s30 = scalar_lea.vmem %s1149_s13, 128  ;;  %p1790_p10 = scmp.lt.s32.totalorder %s1149_s13, %s1149_s13 }
  0xa8   : > { %v1658_v11 = vld [vmem:[#allocation9 + $0x38] sm:$0xff]   ;;  %v393_v19 = vld [vmem:[%s2241_s5 + $0x4] sm:$0x7]  ;;  %v392_v20 = vld [vmem:[%s2241_s5 + $0x1] sm:$0x7]  ;;  %p1784_p4 = scmp.ne.s32.totalorder %s1149_s13, %s1783_s30  ;;  %p1791_p11 = scmp.lt.s32.totalorder %s1783_s30, %s1783_s30 }
  0xa9   : > { %1418 = vmatpush3.bf16.msra.mxu0 %v1594_v18  ;;  %v514_v18 = vsub.s32 0, %v513_v17 }
  0xaa   : > { %1419 = vmatprep.subr.bf16.mxu0 %v1881_v2  ;;  %666 = vmatpush1.bf16.msra.mxu1 %v1609_v22  ;;  %p1785_p5 = pnand %p1784_p4, %p2188_p1  ;;  %p1792_p13 = por %p1791_p11, %p1790_p10 }
  0xab   : > { %667 = vmatprep.subr.bf16.mxu1 %v1611_v23  ;;  %v773_v22 = vrot.slane %v393_v19, %v514_v18 }
  0xac   : > { %p1786_p8 = pneg %p1785_p5 }
  0xad   : > { %1420 = vmatpush3.bf16.msra.mxu0 %v1598_v21  ;;  %v515_v21 = vrot.slane %v392_v20, %v514_v18 }
  0xae   : > { %1421 = vmatprep.subr.bf16.mxu0 %v1881_v2  ;;  %668 = vmatpush1.bf16.msra.mxu1 %v1613_v25  ;;  %p1793_p2 = pnand %p1792_p13, %p1786_p8 }
  0xaf   : > { %669 = vmatprep.subr.bf16.mxu1 %v1615_v29  ;;  %v1475_v23 = vadd.f32 %v773_v22, %v515_v21 }
  0xb1   : > { %1422 = vmatpush3.bf16.msra.mxu0 %v1602_v24 }
  0xb2   : > { %1423 = vmatprep.subr.bf16.mxu0 %v1881_v2  ;;  %670 = vmatpush1.bf16.msra.mxu1 %v1617_v30 }
  0xb3   : > { %913 = vmatprep.subr.bf16.mxu1 %v1621_v32 }
  0xb5   : > { %1424 = vmatpush3.bf16.msra.mxu0 %v1606_v26 }
  0xb6   : > { %1425 = vmatprep.subr.bf16.mxu0 %v1881_v2 }
  0xb9   : > { %1426 = vmatpush3.bf16.msra.mxu0 %v1610_v27 }
  0xba   : > { %1427 = vmatprep.subr.bf16.mxu0 %v1881_v2 }
  0xbd   : > { %1428 = vmatpush3.bf16.msra.mxu0 %v1614_v28 }
  0xbe   : > { %1429 = vmatprep.subr.bf16.mxu0 %v1881_v2 }
  0xc1   : > { %1430 = vmatpush3.bf16.msra.mxu0 %v1618_v31 }
  0xc2   : > { %1435 = vmatprep.subr.bf16.mxu0 %v1881_v2 }
 0x177   : > { %v471_v35 = vpop.f32.mrb[0].mxu0 }
 0x178   : > { %v472_v36 = vadd.f32 %v1302_v34, %v471_v35  ;;  %v1413_v37 = vpop.f32.mrb[1].mxu0 }
 0x179   : > { %v474_v38 = vpop.f32.mrb[2].mxu0 }
 0x17a   : > { %v477_v39 = vmax.f32 %v472_v36, 0.0  ;;  %v1414_v40 = vpop.f32.mrb[3].mxu0 }
 0x17c   : > { %v478_v43 = vpack.c.bf16 %v477_v39, %v477_v39 }
 0x17e   : > { %688 = vmatmul.mubr.bf16.vlgmr.msra.gmra.mrb[0].mxu1 %v478_v43  ;;  %1432 = vmatmul.mubr.bf16.vlgmr.msra.gmra.mrb[4].mxu0 %v478_v43 }
 0x17f   : > { %914 = vmatpush1.bf16.msra.mxu1 %v1619_v41  ;;  %1436 = vmatpush3.bf16.msra.mxu0 %v1640_v42  ;;  %v522_v41 = vsub.s32 2, %v513_v17 }
 0x180   : > { %915 = vmatprep.subr.bf16.mxu1 %v1624_v44  ;;  %1437 = vmatprep.subr.bf16.mxu0 %v1881_v2 }
 0x181   : > { %945 = vmatprep.mubr.bf16.mxu1 %v1883_v33  ;;  %1451 = vmatprep.mubr.msk.bf16.mxu0 %vm1882_vm0, %v1881_v2  ;;  %v781_v42 = vrot.slane %v393_v19, %v522_v41  ;;  %v523_v43 = vrot.slane %v392_v20, %v522_v41 }
 0x183   : > { %916 = vmatpush1.bf16.msra.mxu1 %v1622_v45  ;;  %1438 = vmatpush3.bf16.msra.mxu0 %v1644_v46 }
 0x184   : > { %917 = vmatprep.subr.bf16.mxu1 %v1627_v47  ;;  %1439 = vmatprep.subr.bf16.mxu0 %v1881_v2 }
 0x187   : > { %918 = vmatpush1.bf16.msra.mxu1 %v1625_v48  ;;  %1440 = vmatpush3.bf16.msra.mxu0 %v1645_v49 }
 0x188   : > { %919 = vmatprep.subr.bf16.mxu1 %v1630_v50  ;;  %1441 = vmatprep.subr.bf16.mxu0 %v1881_v2 }
 0x18b   : > { %920 = vmatpush1.bf16.msra.mxu1 %v1628_v51  ;;  %1442 = vmatpush3.bf16.msra.mxu0 %v1646_v52 }
 0x18c   : > { %921 = vmatprep.subr.bf16.mxu1 %v1633_v53  ;;  %1443 = vmatprep.subr.bf16.mxu0 %v1881_v2 }
 0x18f   : > { %922 = vmatpush1.bf16.msra.mxu1 %v1631_v54  ;;  %1444 = vmatpush3.bf16.msra.mxu0 %v1647_v55 }
 0x190   : > { %923 = vmatprep.subr.bf16.mxu1 %v1636_v56  ;;  %1445 = vmatprep.subr.bf16.mxu0 %v1881_v2 }
 0x193   : > { %924 = vmatpush1.bf16.msra.mxu1 %v1634_v57  ;;  %1446 = vmatpush3.bf16.msra.mxu0 %v1648_v58 }
 0x194   : > { %925 = vmatprep.subr.bf16.mxu1 %v1639_v59  ;;  %1447 = vmatprep.subr.bf16.mxu0 %v1881_v2 }
 0x197   : > { %926 = vmatpush1.bf16.msra.mxu1 %v1637_v60  ;;  %1448 = vmatpush3.bf16.msra.mxu0 %v1649_v61 }
 0x198   : > { %927 = vmatprep.subr.bf16.mxu1 %v1643_v62  ;;  %1449 = vmatprep.subr.bf16.mxu0 %v1881_v2 }
 0x19b   : > { %928 = vmatpush1.bf16.msra.mxu1 %v1641_v63  ;;  %1450 = vmatpush3.bf16.msra.mxu0 %v1650_v1 }
 0x19c   : > { %1455 = vmatprep.subr.bf16.mxu1 %v1881_v2 }
 0x19e   : > { %946 = vmatmul.mubr.bf16.vlgmr.msra.gmra.mrb[0].mxu1 %v736_v3  ;;  %1452 = vmatmul.mubr.bf16.vlgmr.msra.gmra.mrb[8].mxu0 %v736_v3 }
 0x19f   : > { %1471 = vmatprep.mubr.msk.bf16.mxu1 %vm1882_vm0, %v1881_v2  ;;  %1456 = vmatpush3.bf16.msra.mxu1 %v1651_v4 }
 0x1a0   : > { %1457 = vmatprep.subr.bf16.mxu1 %v1881_v2 }
 0x1a3   : > { %1458 = vmatpush3.bf16.msra.mxu1 %v1652_v5 }
 0x1a4   : > { %1459 = vmatprep.subr.bf16.mxu1 %v1881_v2 }
 0x1a7   : > { %1460 = vmatpush3.bf16.msra.mxu1 %v1653_v6 }
 0x1a8   : > { %1461 = vmatprep.subr.bf16.mxu1 %v1881_v2 }
 0x1ab   : > { %1462 = vmatpush3.bf16.msra.mxu1 %v1654_v7 }
 0x1ac   : > { %1463 = vmatprep.subr.bf16.mxu1 %v1881_v2 }
 0x1af   : > { %1464 = vmatpush3.bf16.msra.mxu1 %v1655_v8 }
 0x1b0   : > { %1465 = vmatprep.subr.bf16.mxu1 %v1881_v2 }
 0x1b3   : > { %1466 = vmatpush3.bf16.msra.mxu1 %v1656_v9 }
 0x1b4   : > { %1467 = vmatprep.subr.bf16.mxu1 %v1881_v2 }
 0x1b7   : > { %1468 = vmatpush3.bf16.msra.mxu1 %v1657_v10 }
 0x1b8   : > { %1469 = vmatprep.subr.bf16.mxu1 %v1881_v2  ;;  %v518_v2 = vsub.s32 1, %v513_v17 }
 0x1ba   : > { %v519_v27 = vrot.slane %v392_v20, %v518_v2  ;;  %v777_v28 = vrot.slane %v393_v19, %v518_v2 }
 0x1bb   : > { %1470 = vmatpush3.bf16.msra.mxu1 %v1658_v11 }
 0x1bc   : > { %v1477_v36 = vadd.f32 %v777_v28, %v519_v27 }
 0x251   : > { %v730_v12 = vpop.f32.mrb[4].mxu0 }
 0x252   : > { %v1433_v13 = vpop.f32.mrb[5].mxu0  ;;  %v731_v47 = vadd.f32 %v730_v12, %v523_v43 }
 0x253   : > { %v733_v14 = vpop.f32.mrb[6].mxu0 }
 0x254   : > { %v1434_v15 = vpop.f32.mrb[7].mxu0 }
 0x271   : > { %v947_v24 = vpop.f32.mrb[0].mxu1  ;;  %v988_v25 = vpop.f32.mrb[8].mxu0 }
 0x272   : > { %v1476_v26 = vadd.f32 %v1475_v23, %v947_v24  ;;  %v949_v29 = vpop.f32.mrb[1].mxu1  ;;  %v1453_v30 = vpop.f32.mrb[9].mxu0  ;;  %v989_v44 = vadd.f32 %v988_v25, %v781_v42 }
 0x273   : > { %v951_v31 = vpop.f32.mrb[2].mxu1  ;;  %v991_v32 = vpop.f32.mrb[10].mxu0  ;;  %v1478_v37 = vadd.f32 %v1477_v36, %v949_v29 }
 0x274   : > { %v1356_v33 = vmul.f32 -1.442695, %v1476_v26  ;;  %v952_v34 = vpop.f32.mrb[3].mxu1  ;;  %v1454_v35 = vpop.f32.mrb[11].mxu0 }
 0x275   : > { %v1357_v38 = vmul.f32 -1.442695, %v1478_v37 }
 0x276   : > { %1659 = vpow2.f32 %v1356_v33 }
 0x277   : > { %1661 = vpow2.f32 %v1357_v38 }
 0x280   : > { %v1660_v39 = vpop.eup %1659 }
 0x281   : > { %v998_v40 = vadd.f32 1.0, %v1660_v39  ;;  %v1662_v45 = vpop.eup %1661 }
 0x282   : > { %v1005_v49 = vadd.f32 1.0, %v1662_v45 }
 0x283   : > { %1663 = vrcp.f32 %v998_v40 }
 0x28d   : > { %v1664_v46 = vpop.eup %1663 }
 0x28e   : > { %v1008_v48 = vmul.f32 %v1664_v46, %v989_v44 }
 0x290   : > { %v1009_v50 = vadd.f32 %v1008_v48, %v731_v47 }
 0x292   : > { %1665 = vtanh.f32 %v1009_v50 }
 0x293   : > { %1667 = vrcp.f32 %v1005_v49 }
 0x29c   : > { %v1666_v51 = vpop.eup %1665 }
 0x29d   : > { %v1011_v52 = vsub.f32 %v2164_v0, %v1666_v51  ;;  %v1668_v53 = vpop.eup %1667 }
 0x29f   : > { %v1012_v54 = vmul.f32 %v1668_v53, %v1011_v52 }
 0x2a1   : > { %v1013_v55 = vadd.f32 %v1666_v51, %v1012_v54 }
 0x2a3   : > { %v1014_v56 = vpack.c.bf16 %v1013_v55, %v1013_v55  ;;  %1127 = vst [vmem:[#allocation2] sm:$0xff] %v1013_v55  ;;  %1128 = vst [vmem:[#allocation11] sm:$0xff] %v1013_v55 }
 0x2a5   : > { %1472 = vmatmul.mubr.bf16.vlgmr.msra.gmra.mrb[4].mxu1 %v1014_v56 }
 0x2a6   : > { %1796 = shalt.err (!%p1793_p2)
}
 0x2a7   : > { %s1797_s15 = scalar_lea.hbm %s2243_s7, 128 }
 0x2a8   : > { %p1798_p3 = scmp.ne.s32.totalorder %s2243_s7, %s1797_s15  ;;  %p1803_p6 = scmp.lt.u32.totalorder %s1797_s15, %s2243_s7 }
 0x2aa   : > { %p1799_p0 = pnand %p1798_p3, %p2188_p1 }
 0x2ac   : > { %p1800_p12 = pneg %p1799_p0 }
 0x2ae   : > { %p1805_p7 = pnand %p1803_p6, %p1800_p12 }
 0x2b0   : > { %1808 = shalt.err (!%p1805_p7)
}
 0x2b1   : > { %1498 = dma.vmem_to_hbm [thread:$0]  (%p2188_p1), %s1149_s13, 128, %s2243_s7, [#allocation5]   ;;  %v1358_v57 = vld [vmem:[%s2241_s5 + $0x7] ss:$0 sm:$0xff] }
 0x378   : > { %v1120_v58 = vpop.f32.mrb[4].mxu1 }
 0x379   : > { %v1121_v59 = vadd.f32 %v1358_v57, %v1120_v58  ;;  %v1473_v60 = vpop.f32.mrb[5].mxu1 }
 0x37a   : > { %v1123_v61 = vpop.f32.mrb[6].mxu1 }
 0x37b   : > { %1126 = vst [vmem:[%s2128_s11] sm:$0xff] %v1121_v59  ;;  %v1474_v62 = vpop.f32.mrb[7].mxu1 }
 0x37c   : > { %1846 = dma.done.wait (%p2188_p1), [#allocation5], 128  }
 0x37d   : > { %1848 = vsyncadd (%p2188_p1), [#allocation5], 4294967168 }
 0x37e PF: > { %s24_s29 = sadd.s32 1, %s1871_s29   ;;  %s2266_s24 = smov %s1855_s25 }
 0x37f   : > { %p21_p9 = scmp.ge.s32.totalorder %s24_s29, 14   ;;  %s2267_s25 = smov %s1859_s26 }
 0x380   : > { %s2268_s26 = smov %s2067_s22  ;;  %s2269_s27 = smov %s1867_s28 }
 0x381   : > { %s2270_s28 = smov %s2272_s21  ;;  %23 = sbr.rel (!%p21_p9) target bundleno = 9 (0x9), region = 113 }
 0x388   :  { %1171 = vsyncpa [#allocation4], 1 }
 0x389   :  { %1173 = vsyncpa [#allocation4 + $0x1], 1 }
 0x38a   :  { %1174 = vsyncpa [#allocation7], 1 }
 0x38b   :  { %1175 = vsyncpa [#allocation10], 1 }
 0x38c   :  { %1176 = vsyncpa [#allocation5], 1 }
 0x38d   :  { %1178 = vsyncpa [#allocation5 + $0x1], 1 }

</bundles_post_ra>
